<compile_context>
chip_gen: v7x
topology: tpu7x:2x2x1
jax: 0.10.0
libtpu: 0.0.40
codegen_flags: <defaults>
</compile_context>

<pallas_src>
import functools

import jax
import jax.numpy as jnp
from jax import lax
from jax.experimental import pallas as pl
from jax.experimental.pallas import tpu as pltpu

LANES = 128
# Per pipeline buffer, counting BOTH inputs (each input is double-buffered).
TILE_BYTES_PER_BUFFER = 8 * 1024 * 1024
VMEM_LIMIT_BYTES = 32 * 1024 * 1024
NUM_CORES = 2          # leading "parallel" axis; shards across v7x's two TCs


def _sublane_tile(dtype):
    """Packed second-minor tile: 8 for 4-byte, 16 for 2-byte, 32 for 1-byte."""
    return max(8, 32 // jnp.dtype(dtype).itemsize)


def _fbeta_partial_kernel(pred_ref, targ_ref, inter_out, psum_out, tsum_out,
                          *, num_blocks, blocks_per_core, last_full_row,
                          rem_lanes, approx_sigmoid):
    c = pl.program_id(0)                       # "parallel" core axis
    i = pl.program_id(1)                       # sequential row-block axis
    global_block = c * blocks_per_core + i

    # Output blocks are resident across the i axis (constant out index_map):
    # init once per core, accumulate every step, single writeback at the end.
    @pl.when(i == 0)
    def _init():
        inter_out[...] = jnp.zeros_like(inter_out)
        psum_out[...] = jnp.zeros_like(psum_out)
        tsum_out[...] = jnp.zeros_like(tsum_out)

    blk_r, lanes = pred_ref.shape
    groups = blk_r // 8                        # blk_r is always a multiple of 8

    def sigmoid(x):
        e = jnp.exp(-x)                                   # EUP
        if approx_sigmoid:
            return pl.reciprocal(1.0 + e, approx=True)    # EUP, off the VALU path
        return 1.0 / (1.0 + e)                            # exact (strict checks)

    def accumulate(p, t):
        # vreg-wide accumulation: fold groups of 8 rows with plain VALU adds;
        # the final (8, 128) -> scalar reduction happens once in the wrapper.
        inter_out[...] += jnp.sum((p * t).reshape(groups, 8, lanes), axis=0)
        psum_out[...] += jnp.sum(p.reshape(groups, 8, lanes), axis=0)
        tsum_out[...] += jnp.sum(t.reshape(groups, 8, lanes), axis=0)

    is_tail = global_block == num_blocks - 1

    # Fast path: fully-valid blocks, no per-element masking on the hot path.
    @pl.when(jnp.logical_and(global_block < num_blocks, jnp.logical_not(is_tail)))
    def _full_block():
        p = sigmoid(pred_ref[...].astype(jnp.float32))
        t = targ_ref[...].astype(jnp.float32)
        accumulate(p, t)

    # Tail path: the last valid block masks the lane pad, the padded rows and
    # the garbage rows of a partial BlockSpec block.  Row-level comparison
    # (no element-index product) -> no int32 overflow for huge inputs.
    @pl.when(is_tail)
    def _tail_block():
        row0 = global_block * blk_r
        abs_row = row0 + lax.broadcasted_iota(jnp.int32, (blk_r, lanes), 0)
        lane = lax.broadcasted_iota(jnp.int32, (blk_r, lanes), 1)
        valid = jnp.logical_or(
            abs_row < last_full_row,
            jnp.logical_and(abs_row == last_full_row, lane < rem_lanes))
        p = jnp.where(valid, sigmoid(pred_ref[...].astype(jnp.float32)), 0.0)
        t = jnp.where(valid, targ_ref[...].astype(jnp.float32), 0.0)
        accumulate(p, t)
    # NOTE: a core's overhang step (global_block == num_blocks, only when the
    # block count is odd) matches neither branch and contributes nothing; its
    # index_map is clamped to the last valid block so the DMA stays in bounds.


def fbeta_loss(pred, target, beta, epsilon=1e-6, *,
               approx_sigmoid=True, max_tile_rows=None):
    """F-beta loss matching the PyTorch module's forward pass."""
    n = pred.size
    assert target.size == n

    pred_flat = jnp.reshape(pred, (-1,))
    targ_flat = jnp.reshape(target, (-1,))

    row_quant = max(_sublane_tile(pred.dtype), _sublane_tile(target.dtype))
    rows = pl.cdiv(n, LANES)
    rows_padded = pl.cdiv(rows, row_quant) * row_quant
    pad = rows_padded * LANES - n
    if pad:
        # <= row_quant*128 - 1 elements; pad values are masked in-kernel.
        pred_flat = jnp.pad(pred_flat, (0, pad))
        targ_flat = jnp.pad(targ_flat, (0, pad))
    pred2d = pred_flat.reshape(rows_padded, LANES)
    targ2d = targ_flat.reshape(rows_padded, LANES)

    # Row tile from the VMEM byte budget (both inputs, per pipeline buffer),
    # rounded to the packed sublane tile; shrink to the whole array if small.
    bytes_per_row = LANES * (jnp.dtype(pred.dtype).itemsize
                             + jnp.dtype(target.dtype).itemsize)
    budget_rows = max(row_quant,
                      (TILE_BYTES_PER_BUFFER // bytes_per_row)
                      // row_quant * row_quant)
    if max_tile_rows is not None:   # test hook: force multi-block at small sizes
        budget_rows = min(budget_rows,
                          max(row_quant, (max_tile_rows // row_quant) * row_quant))
    blk_r = min(budget_rows, rows_padded)
    num_blocks = pl.cdiv(rows_padded, blk_r)

    # Always split across both TensorCores when there is more than one block
    # (v7x); the odd-block overhang is clamped / skipped instead of falling
    # back to a single core.
    cores = NUM_CORES if num_blocks >= NUM_CORES else 1
    blocks_per_core = pl.cdiv(num_blocks, cores)

    if cores * blocks_per_core == num_blocks:
        in_map = lambda c, i: (c * blocks_per_core + i, 0)
    else:
        in_map = lambda c, i: (jnp.minimum(c * blocks_per_core + i,
                                           num_blocks - 1), 0)
    out_map = lambda c, i: (c, 0)

    kernel = functools.partial(
        _fbeta_partial_kernel,
        num_blocks=num_blocks,
        blocks_per_core=blocks_per_core,
        last_full_row=n // LANES,
        rem_lanes=n % LANES,
        approx_sigmoid=approx_sigmoid,
    )

    in_bytes = n * (jnp.dtype(pred.dtype).itemsize
                    + jnp.dtype(target.dtype).itemsize)
    out_bytes = 3 * cores * 8 * LANES * 4
    cost = pl.CostEstimate(flops=6 * n, transcendentals=2 * n,
                           bytes_accessed=in_bytes + out_bytes)

    inter, psum, tsum = pl.pallas_call(
        kernel,
        out_shape=(
            jax.ShapeDtypeStruct((cores * 8, LANES), jnp.float32),
            jax.ShapeDtypeStruct((cores * 8, LANES), jnp.float32),
            jax.ShapeDtypeStruct((cores * 8, LANES), jnp.float32),
        ),
        grid_spec=pltpu.PrefetchScalarGridSpec(
            num_scalar_prefetch=0,
            grid=(cores, blocks_per_core),
            in_specs=[
                pl.BlockSpec((blk_r, LANES), in_map),
                pl.BlockSpec((blk_r, LANES), in_map),
            ],
            out_specs=(
                pl.BlockSpec((8, LANES), out_map),
                pl.BlockSpec((8, LANES), out_map),
                pl.BlockSpec((8, LANES), out_map),
            ),
        ),
        compiler_params=pltpu.CompilerParams(
            dimension_semantics=("parallel", "arbitrary"),
            vmem_limit_bytes=VMEM_LIMIT_BYTES),
        cost_estimate=cost,
    )(pred2d, targ2d)

    intersection = jnp.sum(inter)
    pred_sum = jnp.sum(psum)
    targ_sum = jnp.sum(tsum)

    precision = intersection / (pred_sum + epsilon)
    recall = intersection / (targ_sum + epsilon)
    f_beta = ((1.0 + beta ** 2) * (precision * recall)
              / (beta ** 2 * precision + recall + epsilon))
    return 1.0 - f_beta


def fbeta_loss_ref(pred, target, beta, epsilon=1e-6):
    """Pure-JAX reference mirroring the PyTorch module."""
    p = jax.nn.sigmoid(pred.astype(jnp.float32)).reshape(-1)
    t = target.astype(jnp.float32).reshape(-1)
    intersection = jnp.sum(p * t)
    precision = intersection / (jnp.sum(p) + epsilon)
    recall = intersection / (jnp.sum(t) + epsilon)
    f_beta = ((1.0 + beta ** 2) * (precision * recall)
              / (beta ** 2 * precision + recall + epsilon))
    return 1.0 - f_beta


if __name__ == "__main__":
    beta = 2.0  # module hyperparameter, chosen deterministically in-script
    key = jax.random.PRNGKey(0)
    k_pred, k_targ, k_pred2, k_targ2 = jax.random.split(key, 4)

    # --- Main case: NCHW logits / binary targets, single-block path. ---
    pred = jax.random.normal(k_pred, (2, 4, 16, 16), dtype=jnp.float32)
    target = (jax.random.uniform(k_targ, (2, 4, 16, 16)) > 0.5).astype(jnp.float32)
    ref = fbeta_loss_ref(pred, target, beta)

    # Strict check with the exact sigmoid path.
    loss_exact = jax.block_until_ready(
        fbeta_loss(pred, target, beta, approx_sigmoid=False))
    assert jnp.allclose(loss_exact, ref, atol=1e-5, rtol=1e-5), (loss_exact, ref)

    # Production path (approximate EUP reciprocal); looser sanity tolerance.
    loss_fast = jax.block_until_ready(fbeta_loss(pred, target, beta))
    assert jnp.allclose(loss_fast, ref, atol=5e-3, rtol=5e-3), (loss_fast, ref)

    # --- Ragged case: lane pad + row pad + odd block count (2-core overhang). ---
    pred_r = jax.random.normal(k_pred2, (2, 3, 33, 37), dtype=jnp.float32)
    target_r = (jax.random.uniform(k_targ2, (2, 3, 33, 37)) > 0.5).astype(jnp.float32)
    loss_r = jax.block_until_ready(
        fbeta_loss(pred_r, target_r, beta, approx_sigmoid=False, max_tile_rows=24))
    ref_r = fbeta_loss_ref(pred_r, target_r, beta)
    assert jnp.allclose(loss_r, ref_r, atol=1e-5, rtol=1e-5), (loss_r, ref_r)

    # --- Narrow storage dtype (bf16 logits): exercises the 16-row tile quantum. ---
    pred_b = pred.astype(jnp.bfloat16)
    loss_b = jax.block_until_ready(
        fbeta_loss(pred_b, target, beta, approx_sigmoid=False))
    ref_b = fbeta_loss_ref(pred_b, target, beta)
    assert jnp.allclose(loss_b, ref_b, atol=1e-5, rtol=1e-5), (loss_b, ref_b)

    print("KERNEL_OK")
</pallas_src>

<mosaic_0001>
module attributes {stable_mosaic.version = 11 : i64} {
  func.func @_fbeta_partial_kernel(%arg0: i32, %arg1: i32, %arg2: memref<16x128xf32, #tpu.memory_space<vmem>>, %arg3: memref<16x128xf32, #tpu.memory_space<vmem>>, %arg4: memref<8x128xf32, #tpu.memory_space<vmem>>, %arg5: memref<8x128xf32, #tpu.memory_space<vmem>>, %arg6: memref<8x128xf32, #tpu.memory_space<vmem>>) attributes {dimension_semantics = [#tpu.dimension_semantics<parallel>, #tpu.dimension_semantics<arbitrary>], iteration_bounds = array<i64: 1, 1>, scalar_prefetch = 0 : i64, scratch_operands = 0 : i64, tpu.core_type = #tpu.core_type<tc>, window_params = [{transform_indices = @transform_0, window_bounds = array<i64: 16, 128>}, {transform_indices = @transform_1, window_bounds = array<i64: 16, 128>}, {transform_indices = @transform_2, window_bounds = array<i64: 8, 128>}, {transform_indices = @transform_3, window_bounds = array<i64: 8, 128>}, {transform_indices = @transform_4, window_bounds = array<i64: 8, 128>}]} {
    %c1_i32 = arith.constant 1 : i32
    %0 = arith.muli %arg0, %c1_i32 : i32
    %1 = arith.addi %0, %arg1 : i32
    %c0_i32 = arith.constant 0 : i32
    %2 = arith.cmpi eq, %arg1, %c0_i32 : i32
    %3 = arith.extui %2 : i1 to i32
    %c0_i32_0 = arith.constant 0 : i32
    %4 = arith.cmpi ne, %3, %c0_i32_0 : i32
    scf.if %4 {
      %cst = arith.constant 0.000000e+00 : f32
      %13 = vector.broadcast %cst : f32 to vector<8x128xf32>
      %c0 = arith.constant 0 : index
      %c0_5 = arith.constant 0 : index
      %14 = vector.load %arg4[%c0, %c0_5] : memref<8x128xf32, #tpu.memory_space<vmem>>, vector<8x128xf32>
      tpu.vector_store %arg4[%c0, %c0_5], %13 {strides = array<i32>} : memref<8x128xf32, #tpu.memory_space<vmem>>, vector<8x128xf32>,
      %cst_6 = arith.constant 0.000000e+00 : f32
      %15 = vector.broadcast %cst_6 : f32 to vector<8x128xf32>
      %c0_7 = arith.constant 0 : index
      %c0_8 = arith.constant 0 : index
      %16 = vector.load %arg5[%c0_7, %c0_8] : memref<8x128xf32, #tpu.memory_space<vmem>>, vector<8x128xf32>
      tpu.vector_store %arg5[%c0_7, %c0_8], %15 {strides = array<i32>} : memref<8x128xf32, #tpu.memory_space<vmem>>, vector<8x128xf32>,
      %cst_9 = arith.constant 0.000000e+00 : f32
      %17 = vector.broadcast %cst_9 : f32 to vector<8x128xf32>
      %c0_10 = arith.constant 0 : index
      %c0_11 = arith.constant 0 : index
      %18 = vector.load %arg6[%c0_10, %c0_11] : memref<8x128xf32, #tpu.memory_space<vmem>>, vector<8x128xf32>
      tpu.vector_store %arg6[%c0_10, %c0_11], %17 {strides = array<i32>} : memref<8x128xf32, #tpu.memory_space<vmem>>, vector<8x128xf32>,
    } else {
    }
    %c0_i32_1 = arith.constant 0 : i32
    %5 = arith.cmpi eq, %1, %c0_i32_1 : i32
    %c1_i32_2 = arith.constant 1 : i32
    %6 = arith.cmpi slt, %1, %c1_i32_2 : i32
    %true = arith.constant true
    %7 = arith.xori %5, %true : i1
    %8 = arith.andi %6, %7 : i1
    %9 = arith.extui %8 : i1 to i32
    %c0_i32_3 = arith.constant 0 : i32
    %10 = arith.cmpi ne, %9, %c0_i32_3 : i32
    scf.if %10 {
      %c0 = arith.constant 0 : index
      %c0_5 = arith.constant 0 : index
      %13 = vector.load %arg2[%c0, %c0_5] : memref<16x128xf32, #tpu.memory_space<vmem>>, vector<16x128xf32>
      %cst = arith.constant 0.000000e+00 : f32
      %14 = vector.broadcast %cst : f32 to vector<16x128xf32>
      %15 = arith.subf %14, %13 : vector<16x128xf32>
      %16 = math.exp %15 : vector<16x128xf32>
      %cst_6 = arith.constant 1.000000e+00 : f32
      %17 = vector.broadcast %cst_6 : f32 to vector<16x128xf32>
      %18 = arith.addf %17, %16 : vector<16x128xf32>
      %cst_7 = arith.constant 1.000000e+00 : f32
      %19 = vector.broadcast %cst_7 : f32 to vector<16x128xf32>
      %20 = arith.divf %19, %18 : vector<16x128xf32>
      %c0_8 = arith.constant 0 : index
      %c0_9 = arith.constant 0 : index
      %21 = vector.load %arg3[%c0_8, %c0_9] : memref<16x128xf32, #tpu.memory_space<vmem>>, vector<16x128xf32>
      %c0_10 = arith.constant 0 : index
      %c0_11 = arith.constant 0 : index
      %22 = vector.load %arg4[%c0_10, %c0_11] : memref<8x128xf32, #tpu.memory_space<vmem>>, vector<8x128xf32>
      %23 = arith.mulf %20, %21 : vector<16x128xf32>
      %24 = vector.shape_cast %23 : vector<16x128xf32> to vector<2x8x128xf32>
      %cst_12 = arith.constant dense<0.000000e+00> : vector<8x128xf32>
      %25 = vector.multi_reduction <add>, %24, %cst_12 [0] : vector<2x8x128xf32> to vector<8x128xf32>
      %26 = arith.addf %22, %25 : vector<8x128xf32>
      %c0_13 = arith.constant 0 : index
      %c0_14 = arith.constant 0 : index
      %27 = vector.load %arg4[%c0_13, %c0_14] : memref<8x128xf32, #tpu.memory_space<vmem>>, vector<8x128xf32>
      tpu.vector_store %arg4[%c0_13, %c0_14], %26 {strides = array<i32>} : memref<8x128xf32, #tpu.memory_space<vmem>>, vector<8x128xf32>,
      %c0_15 = arith.constant 0 : index
      %c0_16 = arith.constant 0 : index
      %28 = vector.load %arg5[%c0_15, %c0_16] : memref<8x128xf32, #tpu.memory_space<vmem>>, vector<8x128xf32>
      %29 = vector.shape_cast %20 : vector<16x128xf32> to vector<2x8x128xf32>
      %cst_17 = arith.constant dense<0.000000e+00> : vector<8x128xf32>
      %30 = vector.multi_reduction <add>, %29, %cst_17 [0] : vector<2x8x128xf32> to vector<8x128xf32>
      %31 = arith.addf %28, %30 : vector<8x128xf32>
      %c0_18 = arith.constant 0 : index
      %c0_19 = arith.constant 0 : index
      %32 = vector.load %arg5[%c0_18, %c0_19] : memref<8x128xf32, #tpu.memory_space<vmem>>, vector<8x128xf32>
      tpu.vector_store %arg5[%c0_18, %c0_19], %31 {strides = array<i32>} : memref<8x128xf32, #tpu.memory_space<vmem>>, vector<8x128xf32>,
      %c0_20 = arith.constant 0 : index
      %c0_21 = arith.constant 0 : index
      %33 = vector.load %arg6[%c0_20, %c0_21] : memref<8x128xf32, #tpu.memory_space<vmem>>, vector<8x128xf32>
      %34 = vector.shape_cast %21 : vector<16x128xf32> to vector<2x8x128xf32>
      %cst_22 = arith.constant dense<0.000000e+00> : vector<8x128xf32>
      %35 = vector.multi_reduction <add>, %34, %cst_22 [0] : vector<2x8x128xf32> to vector<8x128xf32>
      %36 = arith.addf %33, %35 : vector<8x128xf32>
      %c0_23 = arith.constant 0 : index
      %c0_24 = arith.constant 0 : index
      %37 = vector.load %arg6[%c0_23, %c0_24] : memref<8x128xf32, #tpu.memory_space<vmem>>, vector<8x128xf32>
      tpu.vector_store %arg6[%c0_23, %c0_24], %36 {strides = array<i32>} : memref<8x128xf32, #tpu.memory_space<vmem>>, vector<8x128xf32>,
    } else {
    }
    %11 = arith.extui %5 : i1 to i32
    %c0_i32_4 = arith.constant 0 : i32
    %12 = arith.cmpi ne, %11, %c0_i32_4 : i32
    scf.if %12 {
      %c16_i32 = arith.constant 16 : i32
      %13 = arith.muli %1, %c16_i32 : i32
      %14 = tpu.iota {dimensions = array<i32: 0>} : vector<16x128xi32>
      %15 = vector.broadcast %13 : i32 to vector<16x128xi32>
      %16 = arith.addi %15, %14 : vector<16x128xi32>
      %17 = tpu.iota {dimensions = array<i32: 1>} : vector<16x128xi32>
      %c16_i32_5 = arith.constant 16 : i32
      %18 = vector.broadcast %c16_i32_5 : i32 to vector<16x128xi32>
      %19 = arith.cmpi slt, %16, %18 : vector<16x128xi32>
      %c16_i32_6 = arith.constant 16 : i32
      %20 = vector.broadcast %c16_i32_6 : i32 to vector<16x128xi32>
      %21 = arith.cmpi eq, %16, %20 : vector<16x128xi32>
      %c0_i32_7 = arith.constant 0 : i32
      %22 = vector.broadcast %c0_i32_7 : i32 to vector<16x128xi32>
      %23 = arith.cmpi slt, %17, %22 : vector<16x128xi32>
      %24 = arith.andi %21, %23 : vector<16x128xi1>
      %25 = arith.ori %19, %24 : vector<16x128xi1>
      %c0 = arith.constant 0 : index
      %c0_8 = arith.constant 0 : index
      %26 = vector.load %arg2[%c0, %c0_8] : memref<16x128xf32, #tpu.memory_space<vmem>>, vector<16x128xf32>
      %cst = arith.constant 0.000000e+00 : f32
      %27 = vector.broadcast %cst : f32 to vector<16x128xf32>
      %28 = arith.subf %27, %26 : vector<16x128xf32>
      %29 = math.exp %28 : vector<16x128xf32>
      %cst_9 = arith.constant 1.000000e+00 : f32
      %30 = vector.broadcast %cst_9 : f32 to vector<16x128xf32>
      %31 = arith.addf %30, %29 : vector<16x128xf32>
      %cst_10 = arith.constant 1.000000e+00 : f32
      %32 = vector.broadcast %cst_10 : f32 to vector<16x128xf32>
      %33 = arith.divf %32, %31 : vector<16x128xf32>
      %cst_11 = arith.constant 0.000000e+00 : f32
      %34 = vector.broadcast %cst_11 : f32 to vector<16x128xf32>
      %35 = arith.select %25, %33, %34 : vector<16x128xi1>, vector<16x128xf32>
      %c0_12 = arith.constant 0 : index
      %c0_13 = arith.constant 0 : index
      %36 = vector.load %arg3[%c0_12, %c0_13] : memref<16x128xf32, #tpu.memory_space<vmem>>, vector<16x128xf32>
      %cst_14 = arith.constant 0.000000e+00 : f32
      %37 = vector.broadcast %cst_14 : f32 to vector<16x128xf32>
      %38 = arith.select %25, %36, %37 : vector<16x128xi1>, vector<16x128xf32>
      %c0_15 = arith.constant 0 : index
      %c0_16 = arith.constant 0 : index
      %39 = vector.load %arg4[%c0_15, %c0_16] : memref<8x128xf32, #tpu.memory_space<vmem>>, vector<8x128xf32>
      %40 = arith.mulf %35, %38 : vector<16x128xf32>
      %41 = vector.shape_cast %40 : vector<16x128xf32> to vector<2x8x128xf32>
      %cst_17 = arith.constant dense<0.000000e+00> : vector<8x128xf32>
      %42 = vector.multi_reduction <add>, %41, %cst_17 [0] : vector<2x8x128xf32> to vector<8x128xf32>
      %43 = arith.addf %39, %42 : vector<8x128xf32>
      %c0_18 = arith.constant 0 : index
      %c0_19 = arith.constant 0 : index
      %44 = vector.load %arg4[%c0_18, %c0_19] : memref<8x128xf32, #tpu.memory_space<vmem>>, vector<8x128xf32>
      tpu.vector_store %arg4[%c0_18, %c0_19], %43 {strides = array<i32>} : memref<8x128xf32, #tpu.memory_space<vmem>>, vector<8x128xf32>,
      %c0_20 = arith.constant 0 : index
      %c0_21 = arith.constant 0 : index
      %45 = vector.load %arg5[%c0_20, %c0_21] : memref<8x128xf32, #tpu.memory_space<vmem>>, vector<8x128xf32>
      %46 = vector.shape_cast %35 : vector<16x128xf32> to vector<2x8x128xf32>
      %cst_22 = arith.constant dense<0.000000e+00> : vector<8x128xf32>
      %47 = vector.multi_reduction <add>, %46, %cst_22 [0] : vector<2x8x128xf32> to vector<8x128xf32>
      %48 = arith.addf %45, %47 : vector<8x128xf32>
      %c0_23 = arith.constant 0 : index
      %c0_24 = arith.constant 0 : index
      %49 = vector.load %arg5[%c0_23, %c0_24] : memref<8x128xf32, #tpu.memory_space<vmem>>, vector<8x128xf32>
      tpu.vector_store %arg5[%c0_23, %c0_24], %48 {strides = array<i32>} : memref<8x128xf32, #tpu.memory_space<vmem>>, vector<8x128xf32>,
      %c0_25 = arith.constant 0 : index
      %c0_26 = arith.constant 0 : index
      %50 = vector.load %arg6[%c0_25, %c0_26] : memref<8x128xf32, #tpu.memory_space<vmem>>, vector<8x128xf32>
      %51 = vector.shape_cast %38 : vector<16x128xf32> to vector<2x8x128xf32>
      %cst_27 = arith.constant dense<0.000000e+00> : vector<8x128xf32>
      %52 = vector.multi_reduction <add>, %51, %cst_27 [0] : vector<2x8x128xf32> to vector<8x128xf32>
      %53 = arith.addf %50, %52 : vector<8x128xf32>
      %c0_28 = arith.constant 0 : index
      %c0_29 = arith.constant 0 : index
      %54 = vector.load %arg6[%c0_28, %c0_29] : memref<8x128xf32, #tpu.memory_space<vmem>>, vector<8x128xf32>
      tpu.vector_store %arg6[%c0_28, %c0_29], %53 {strides = array<i32>} : memref<8x128xf32, #tpu.memory_space<vmem>>, vector<8x128xf32>,
    } else {
    }
    return
  }
  func.func @transform_0(%arg0: i32, %arg1: i32) -> (i32, i32) {
    %c1_i32 = arith.constant 1 : i32
    %0 = arith.muli %arg0, %c1_i32 : i32
    %1 = arith.addi %0, %arg1 : i32
    %c0_i32 = arith.constant 0 : i32
    %c0_i32_0 = arith.constant 0 : i32
    return %1, %c0_i32 : i32, i32
  }
  func.func @transform_1(%arg0: i32, %arg1: i32) -> (i32, i32) {
    %c1_i32 = arith.constant 1 : i32
    %0 = arith.muli %arg0, %c1_i32 : i32
    %1 = arith.addi %0, %arg1 : i32
    %c0_i32 = arith.constant 0 : i32
    %c0_i32_0 = arith.constant 0 : i32
    return %1, %c0_i32 : i32, i32
  }
  func.func @transform_2(%arg0: i32, %arg1: i32) -> (i32, i32) {
    %c0_i32 = arith.constant 0 : i32
    %c0_i32_0 = arith.constant 0 : i32
    return %arg0, %c0_i32 : i32, i32
  }
  func.func @transform_3(%arg0: i32, %arg1: i32) -> (i32, i32) {
    %c0_i32 = arith.constant 0 : i32
    %c0_i32_0 = arith.constant 0 : i32
    return %arg0, %c0_i32 : i32, i32
  }
  func.func @transform_4(%arg0: i32, %arg1: i32) -> (i32, i32) {
    %c0_i32 = arith.constant 0 : i32
    %c0_i32_0 = arith.constant 0 : i32
    return %arg0, %c0_i32 : i32, i32
  }
}

</mosaic_0001>

<bundles_post_ra>
// kernel: tpu_custom_call.1
= control target key start
LH: loop header
LB: loop body
LE: loop exit
PB: predicated region body
PF: predicated region fallthrough
CT: control target
= control target key end

     0   :  { %10 = vsyncpa [#allocation3], 0  ;;  %s439_s0 = inlined_call_operand.hbm [shape: f32[16,128], index: 0, kind: input, shape index: {}]   ;;  %s440_s1 = inlined_call_operand.hbm [shape: f32[16,128], index: 1, kind: input, shape index: {}]   ;;  %s441_s2 = inlined_call_operand.hbm [shape: f32[8,128], index: 2, kind: output, shape index: {0}]   ;;  %s442_s3 = inlined_call_operand.hbm [shape: f32[8,128], index: 3, kind: output, shape index: {1}]   ;;  %s443_s4 = inlined_call_operand.hbm [shape: f32[8,128], index: 4, kind: output, shape index: {2}]  }
   0x1   :  { %11 = vsyncpa [#allocation6], 0 }
   0x2   :  { %12 = vsyncpa [#allocation4], 0 }
   0x3   :  { %13 = vsyncpa [#allocation9], 0  ;;  %s333_s15 = smov [#allocation2]   ;;  %s215_s19 = scalar_lea.hbm %s439_s0, 256 }
   0x4   :  { %s23_s16 = sshll.u32 %s333_s15, 4  ;;  %p216_p0 = scmp.ne.s32.totalorder %s439_s0, %s215_s19  ;;  %s24_s16 = int_to_ptr.vmem [resolvable:$true] %s23_s16 }
   0x5   :  { %p219_p1 = scmp.lt.u32.totalorder %s215_s19, %s439_s0 }
   0x7   :  { %p221_p2 = pnand %p219_p1, %p216_p0 }
   0x9   :  { %224 = shalt.err (!%p221_p2)
}
   0xa   :  { %s225_s24 = scalar_lea.vmem %s24_s16, 256  ;;  %p230_p4 = scmp.lt.s32.totalorder %s24_s16, %s24_s16 }
   0xb   :  { %p226_p3 = scmp.ne.s32.totalorder %s24_s16, %s225_s24  ;;  %p231_p5 = scmp.lt.s32.totalorder %s225_s24, %s225_s24 }
   0xd   :  { %p232_p6 = por %p231_p5, %p230_p4 }
   0xf   :  { %p233_p7 = pnand %p232_p6, %p226_p3 }
  0x11   :  { %236 = shalt.err (!%p233_p7)
}
  0x12   :  { %s334_s25 = smov 128   ;;  %s335_s26 = smov 8  }
  0x13   :  { %29 = dma.hbm_to_vmem [thread:$0]  %s439_s0, 256, %s24_s16, [#allocation3], %s334_s25, %s334_s25, %s335_s26  }
  0x14   :  { %s336_s29 = smov [#allocation5]   ;;  %s237_s7 = scalar_lea.hbm %s440_s1, 256 }
  0x15   :  { %s39_s30 = sshll.u32 %s336_s29, 4  ;;  %p238_p8 = scmp.ne.s32.totalorder %s440_s1, %s237_s7  ;;  %s40_s30 = int_to_ptr.vmem [resolvable:$true] %s39_s30 }
  0x16   :  { %p241_p9 = scmp.lt.u32.totalorder %s237_s7, %s440_s1 }
  0x18   :  { %p243_p10 = pnand %p241_p9, %p238_p8 }
  0x1a   :  { %246 = shalt.err (!%p243_p10)
}
  0x1b   :  { %s247_s12 = scalar_lea.vmem %s40_s30, 256  ;;  %p252_p12 = scmp.lt.s32.totalorder %s40_s30, %s40_s30 }
  0x1c   :  { %p248_p11 = scmp.ne.s32.totalorder %s40_s30, %s247_s12  ;;  %p253_p13 = scmp.lt.s32.totalorder %s247_s12, %s247_s12 }
  0x1e   :  { %p254_p0 = por %p253_p13, %p252_p12 }
  0x20   :  { %p255_p1 = pnand %p254_p0, %p248_p11 }
  0x22   :  { %258 = shalt.err (!%p255_p1)
}
  0x23   :  { %45 = dma.hbm_to_vmem [thread:$0]  %s440_s1, 256, %s40_s30, [#allocation6], %s334_s25, %s334_s25, %s335_s26  }
  0x24   :  { %325 = dma.done.wait [#allocation3], 256  }
  0x25   :  { %326 = vsyncadd [#allocation3], 4294967040 }
  0x26   :  { %327 = dma.done.wait [#allocation6], 256  }
  0x27   :  { %328 = vsyncadd [#allocation6], 4294967040  ;;  %v122_v0 = vld [vmem:[#allocation2] sm:$0xff]  ;;  %v123_v1 = vld [vmem:[#allocation2 + $0x8] sm:$0xff]  ;;  %s337_s1 = smov [#allocation8]   ;;  %s338_s15 = smov [#allocation10]  }
  0x28   :  { %v124_v2 = vsub.f32 0.0, %v122_v0  ;;  %v125_v3 = vsub.f32 0.0, %v123_v1  ;;  %v138_v4 = vld [vmem:[#allocation5] sm:$0xff]  ;;  %v139_v5 = vld [vmem:[#allocation5 + $0x8] sm:$0xff]  ;;  %s172_s14 = sshll.u32 %s337_s1, 4  ;;  %s182_s16 = sshll.u32 %s338_s15, 4  ;;  %s173_s14 = int_to_ptr.vmem [resolvable:$true] %s172_s14  ;;  %s389_s16 = int_to_ptr.vmem [resolvable:$true] %s182_s16 }
  0x29   :  { %v153_v6 = vadd.f32 %v139_v5, %v138_v4  ;;  %s339_s17 = smov [#allocation7]   ;;  %s259_s19 = scalar_lea.vmem %s173_s14, 128 }
  0x2a   :  { %v126_v7 = vmul.f32 1.442695, %v124_v2  ;;  %v128_v8 = vmul.f32 1.442695, %v125_v3  ;;  %s162_s18 = sshll.u32 %s339_s17, 4  ;;  %p260_p2 = scmp.ne.s32.totalorder %s173_s14, %s259_s19  ;;  %s391_s18 = int_to_ptr.vmem [resolvable:$true] %s162_s18 }
  0x2b   :  { %155 = vst [vmem:[#allocation10] sm:$0xff] %v153_v6  ;;  %p264_p3 = scmp.lt.s32.totalorder %s173_s14, %s173_s14  ;;  %p265_p4 = scmp.lt.s32.totalorder %s259_s19, %s259_s19 }
  0x2c   :  { %207 = vpow2.f32 %v126_v7 }
  0x2d   :  { %209 = vpow2.f32 %v128_v8  ;;  %p266_p5 = por %p265_p4, %p264_p3 }
  0x2f   :  { %p267_p6 = pnand %p266_p5, %p260_p2 }
  0x36   :  { %v208_v9 = vpop.eup %207 }
  0x37   :  { %v210_v10 = vpop.eup %209  ;;  %v130_v11 = vadd.f32 1.0, %v208_v9 }
  0x38   :  { %v131_v12 = vadd.f32 1.0, %v210_v10 }
  0x39   :  { %211 = vrcp.f32 %v130_v11 }
  0x3a   :  { %213 = vrcp.f32 %v131_v12 }
  0x43   :  { %v212_v13 = vpop.eup %211 }
  0x44   :  { %v214_v14 = vpop.eup %213  ;;  %v143_v15 = vmul.f32 %v212_v13, %v138_v4 }
  0x45   :  { %v149_v16 = vadd.f32 %v214_v14, %v212_v13  ;;  %v144_v17 = vmul.f32 %v214_v14, %v139_v5 }
  0x47   :  { %v145_v18 = vadd.f32 %v144_v17, %v143_v15  ;;  %151 = vst [vmem:[#allocation8] sm:$0xff] %v149_v16 }
  0x48   :  { %270 = shalt.err (!%p267_p6)
}
  0x49   :  { %s271_s22 = scalar_lea.hbm %s442_s3, 128 }
  0x4a   :  { %p272_p7 = scmp.ne.s32.totalorder %s442_s3, %s271_s22  ;;  %p275_p8 = scmp.lt.u32.totalorder %s271_s22, %s442_s3 }
  0x4c   :  { %p277_p9 = pnand %p275_p8, %p272_p7 }
  0x4e   :  { %280 = shalt.err (!%p277_p9)
}
  0x4f   :  { %175 = dma.vmem_to_hbm [thread:$0]  %s173_s14, 128, %s442_s3, [#allocation9]   ;;  %147 = vst [vmem:[#allocation7] sm:$0xff] %v145_v18 }
  0x50   :  { %s281_s29 = scalar_lea.vmem %s389_s16, 128  ;;  %p286_p11 = scmp.lt.s32.totalorder %s389_s16, %s389_s16 }
  0x51   :  { %p282_p10 = scmp.ne.s32.totalorder %s389_s16, %s281_s29  ;;  %p287_p12 = scmp.lt.s32.totalorder %s281_s29, %s281_s29 }
  0x53   :  { %p288_p13 = por %p287_p12, %p286_p11 }
  0x55   :  { %p289_p0 = pnand %p288_p13, %p282_p10 }
  0x57   :  { %292 = shalt.err (!%p289_p0)
}
  0x58   :  { %s293_s6 = scalar_lea.hbm %s443_s4, 128 }
  0x59   :  { %p294_p1 = scmp.ne.s32.totalorder %s443_s4, %s293_s6  ;;  %p297_p2 = scmp.lt.u32.totalorder %s293_s6, %s443_s4 }
  0x5b   :  { %p299_p3 = pnand %p297_p2, %p294_p1 }
  0x5d   :  { %302 = shalt.err (!%p299_p3)
}
  0x5e   :  { %185 = dma.vmem_to_hbm [thread:$0]  %s389_s16, 128, %s443_s4, [#allocation9]  }
  0x5f   :  { %s303_s12 = scalar_lea.vmem %s391_s18, 128  ;;  %p308_p5 = scmp.lt.s32.totalorder %s391_s18, %s391_s18 }
  0x60   :  { %p304_p4 = scmp.ne.s32.totalorder %s391_s18, %s303_s12  ;;  %p309_p6 = scmp.lt.s32.totalorder %s303_s12, %s303_s12 }
  0x62   :  { %p310_p7 = por %p309_p6, %p308_p5 }
  0x64   :  { %p311_p8 = pnand %p310_p7, %p304_p4 }
  0x66   :  { %314 = shalt.err (!%p311_p8)
}
  0x67   :  { %s315_s1 = scalar_lea.hbm %s441_s2, 128 }
  0x68   :  { %p316_p9 = scmp.ne.s32.totalorder %s441_s2, %s315_s1  ;;  %p319_p10 = scmp.lt.u32.totalorder %s315_s1, %s441_s2 }
  0x6a   :  { %p321_p11 = pnand %p319_p10, %p316_p9 }
  0x6c   :  { %324 = shalt.err (!%p321_p11)
}
  0x6d   :  { %165 = dma.vmem_to_hbm [thread:$0]  %s391_s18, 128, %s441_s2, [#allocation4]  }
  0x6e   :  { %329 = dma.done.wait [#allocation4], 128  }
  0x6f   :  { %330 = vsyncadd [#allocation4], 4294967168 }
  0x70   :  { %331 = dma.done.wait [#allocation9], 256  }
  0x71   :  { %332 = vsyncadd [#allocation9], 4294967040 }
  0x72   :  { %195 = vsyncpa [#allocation3], 1 }
  0x73   :  { %196 = vsyncpa [#allocation6], 1 }
  0x74   :  { %197 = vsyncpa [#allocation4], 1 }
  0x75   :  { %198 = vsyncpa [#allocation9], 1 }

</bundles_post_ra>
